<compile_context>
chip_gen: v7x
topology: tpu7x:2x2x1
jax: 0.10.0
libtpu: 0.0.40
codegen_flags: <defaults>
</compile_context>

<pallas_src>
import jax
import jax.numpy as jnp
from jax.experimental import pallas as pl
from jax.experimental.pallas import tpu as pltpu

_LANE = 128


def _round_up(x: int, m: int) -> int:
    return ((x + m - 1) // m) * m


def _make_kl_kernel(tile_b: int, tile_d: int, cast_to_f32: bool):
    n_col = tile_d // _LANE    # 128-wide column slices per block (kept small)
    n_fold = tile_b // 8       # sublane groups folded at finalize

    def kl_kernel(mu_ref, lv_ref, out_ref, acc_ref):
        j = pl.program_id(1)

        @pl.when(j == 0)
        def _init():
            acc_ref[...] = jnp.zeros_like(acc_ref)

        mu = mu_ref[...]
        lv = lv_ref[...]
        if cast_to_f32:  # bf16 inputs: upcast in-register (DMA stays bf16)
            mu = mu.astype(jnp.float32)
            lv = lv.astype(jnp.float32)

        # Elementwise KL term: exp(logvar) + mu^2 - 1 - logvar.
        # exp() goes to the EUP slot; the rest is VPU work on the same vregs.
        term = jnp.exp(lv) + mu * mu - 1.0 - lv            # (tile_b, tile_d) f32

        # Lane-dense accumulation: add the vreg-aligned 128-wide column slices
        # into the resident (tile_b, 128) accumulator. Static tile-aligned
        # slices -> pure VPU adds, no cross-lane movement, no per-step reduce.
        partial = acc_ref[...]
        for c in range(n_col):
            partial = partial + term[:, c * _LANE:(c + 1) * _LANE]
        acc_ref[...] = partial

        @pl.when(j == pl.num_programs(1) - 1)
        def _finalize():
            # Fold the (tile_b, 128) partials down to one (8, 128) tile. Any
            # partition of the rows is fine -- all partials are summed (and
            # scaled by 0.5/B) in the wrapper. Static sublane-aligned slices.
            acc = acc_ref[...]
            folded = acc[0:8, :]
            for r in range(1, n_fold):
                folded = folded + acc[r * 8:(r + 1) * 8, :]
            out_ref[...] = folded

    return kl_kernel


def latent_loss(mu: jax.Array, logvar: jax.Array, *,
                target_block_bytes: int = 2 << 20,
                vmem_limit_bytes: int = 32 << 20) -> jax.Array:
    """Pallas implementation of LatentLoss.forward(mu, logvar) -> scalar f32."""
    assert mu.shape == logvar.shape and mu.ndim == 2
    B, D = mu.shape

    # Keep f32/bf16 through the DMA (bf16 halves HBM traffic on this HBM-bound
    # kernel); anything else is upcast to f32 in the wrapper.
    if mu.dtype not in (jnp.float32, jnp.bfloat16):
        mu = mu.astype(jnp.float32)
    if logvar.dtype != mu.dtype:
        logvar = logvar.astype(mu.dtype)
    itemsize = jnp.dtype(mu.dtype).itemsize
    sub = 8 * (4 // itemsize)              # min sublane tile: 8 (f32) / 16 (bf16)

    # --- tile selection: biggest block that fits the VMEM budget -------------
    # 2 inputs x 2 pipeline buffers x block (+ accumulator + temporaries) must
    # stay well inside the scoped VMEM limit (mind v7x's smaller VMEM); ~2 MiB
    # per input block already reaches ~85% of the HBM roofline.
    elems_budget = max(target_block_bytes // itemsize, sub * _LANE)
    # Cap tile_d so the unrolled lane-accumulation loop stays short; the rest
    # of the block budget goes into tile_b (rows).
    max_tile_d = min(32 * _LANE,
                     max(_LANE, (elems_budget // sub) // _LANE * _LANE))
    tile_d = min(_round_up(D, _LANE), max_tile_d)
    tile_b = min(_round_up(B, sub),
                 max(sub, (elems_budget // tile_d) // sub * sub))

    B_pad = _round_up(B, tile_b)
    D_pad = _round_up(D, tile_d)
    if (B_pad, D_pad) != (B, D):
        # zero padding contributes exactly 0 to the sum: exp(0) + 0 - 1 - 0 == 0
        pad = ((0, B_pad - B), (0, D_pad - D))
        mu = jnp.pad(mu, pad)
        logvar = jnp.pad(logvar, pad)

    nb = B_pad // tile_b    # row-block axis ("parallel" -> both TCs on v7x)
    nd = D_pad // tile_d    # feature reduction axis ("arbitrary")

    kernel = _make_kl_kernel(tile_b, tile_d,
                             cast_to_f32=(mu.dtype != jnp.float32))

    partials = pl.pallas_call(
        kernel,
        out_shape=jax.ShapeDtypeStruct((nb * 8, _LANE), jnp.float32),
        grid_spec=pltpu.PrefetchScalarGridSpec(
            num_scalar_prefetch=0,
            grid=(nb, nd),
            in_specs=[
                pl.BlockSpec((tile_b, tile_d), lambda i, j: (i, j)),
                pl.BlockSpec((tile_b, tile_d), lambda i, j: (i, j)),
            ],
            out_specs=pl.BlockSpec((8, _LANE), lambda i, j: (i, 0)),
            scratch_shapes=[pltpu.VMEM((tile_b, _LANE), jnp.float32)],
        ),
        compiler_params=pltpu.CompilerParams(
            dimension_semantics=("parallel", "arbitrary"),
            vmem_limit_bytes=vmem_limit_bytes,
        ),
    )(mu, logvar)

    # Tiny final reduce + scale outside the kernel (keeping per-row-block
    # outputs independent is what lets the "parallel" axis use both TCs).
    return jnp.sum(partials) * (0.5 / B)


if __name__ == "__main__":
    key = jax.random.PRNGKey(0)
    k_mu, k_lv = jax.random.split(key)

    B, D = 8, 256  # small VAE latent: batch=8, latent dim=256
    mu = jax.random.normal(k_mu, (B, D), dtype=jnp.float32)
    logvar = 0.1 * jax.random.normal(k_lv, (B, D), dtype=jnp.float32)

    kl = latent_loss(mu, logvar)
    kl = jax.block_until_ready(kl)

    # pure-JAX reference (mirrors the PyTorch forward exactly)
    kl_ref = 0.5 * jnp.mean(jnp.sum(jnp.exp(logvar) + mu**2 - 1.0 - logvar, axis=1))

    assert jnp.allclose(kl, kl_ref, rtol=1e-5, atol=1e-5), (kl, kl_ref)
    print("KERNEL_OK")
</pallas_src>

<mosaic_0001>
module attributes {stable_mosaic.version = 11 : i64} {
  func.func @kl_kernel(%arg0: i32, %arg1: i32, %arg2: memref<8x256xf32, #tpu.memory_space<vmem>>, %arg3: memref<8x256xf32, #tpu.memory_space<vmem>>, %arg4: memref<8x128xf32, #tpu.memory_space<vmem>>, %arg5: memref<8x128xf32, #tpu.memory_space<vmem>>) attributes {dimension_semantics = [#tpu.dimension_semantics<parallel>, #tpu.dimension_semantics<arbitrary>], iteration_bounds = array<i64: 1, 1>, scalar_prefetch = 0 : i64, scratch_operands = 1 : i64, tpu.core_type = #tpu.core_type<tc>, window_params = [{transform_indices = @transform_0, window_bounds = array<i64: 8, 256>}, {transform_indices = @transform_1, window_bounds = array<i64: 8, 256>}, {transform_indices = @transform_2, window_bounds = array<i64: 8, 128>}]} {
    %c0_i32 = arith.constant 0 : i32
    %0 = arith.cmpi eq, %arg1, %c0_i32 : i32
    %1 = arith.extui %0 : i1 to i32
    %c0_i32_0 = arith.constant 0 : i32
    %2 = arith.cmpi ne, %1, %c0_i32_0 : i32
    scf.if %2 {
      %cst_10 = arith.constant 0.000000e+00 : f32
      %20 = vector.broadcast %cst_10 : f32 to vector<8x128xf32>
      %c0_11 = arith.constant 0 : index
      %c0_12 = arith.constant 0 : index
      %21 = vector.load %arg5[%c0_11, %c0_12] : memref<8x128xf32, #tpu.memory_space<vmem>>, vector<8x128xf32>
      tpu.vector_store %arg5[%c0_11, %c0_12], %20 {strides = array<i32>} : memref<8x128xf32, #tpu.memory_space<vmem>>, vector<8x128xf32>,
    } else {
    }
    %c0 = arith.constant 0 : index
    %c0_1 = arith.constant 0 : index
    %3 = vector.load %arg2[%c0, %c0_1] : memref<8x256xf32, #tpu.memory_space<vmem>>, vector<8x256xf32>
    %c0_2 = arith.constant 0 : index
    %c0_3 = arith.constant 0 : index
    %4 = vector.load %arg3[%c0_2, %c0_3] : memref<8x256xf32, #tpu.memory_space<vmem>>, vector<8x256xf32>
    %5 = math.exp %4 : vector<8x256xf32>
    %6 = arith.mulf %3, %3 : vector<8x256xf32>
    %7 = arith.addf %5, %6 : vector<8x256xf32>
    %cst = arith.constant 1.000000e+00 : f32
    %8 = vector.broadcast %cst : f32 to vector<8x256xf32>
    %9 = arith.subf %7, %8 : vector<8x256xf32>
    %10 = arith.subf %9, %4 : vector<8x256xf32>
    %c0_4 = arith.constant 0 : index
    %c0_5 = arith.constant 0 : index
    %11 = vector.load %arg5[%c0_4, %c0_5] : memref<8x128xf32, #tpu.memory_space<vmem>>, vector<8x128xf32>
    %12 = vector.extract_strided_slice %10 {offsets = [0, 0], sizes = [8, 128], strides = [1, 1]} : vector<8x256xf32> to vector<8x128xf32>
    %13 = arith.addf %11, %12 : vector<8x128xf32>
    %14 = vector.extract_strided_slice %10 {offsets = [0, 128], sizes = [8, 128], strides = [1, 1]} : vector<8x256xf32> to vector<8x128xf32>
    %15 = arith.addf %13, %14 : vector<8x128xf32>
    %c0_6 = arith.constant 0 : index
    %c0_7 = arith.constant 0 : index
    %16 = vector.load %arg5[%c0_6, %c0_7] : memref<8x128xf32, #tpu.memory_space<vmem>>, vector<8x128xf32>
    tpu.vector_store %arg5[%c0_6, %c0_7], %15 {strides = array<i32>} : memref<8x128xf32, #tpu.memory_space<vmem>>, vector<8x128xf32>,
    %c0_i32_8 = arith.constant 0 : i32
    %17 = arith.cmpi eq, %arg1, %c0_i32_8 : i32
    %18 = arith.extui %17 : i1 to i32
    %c0_i32_9 = arith.constant 0 : i32
    %19 = arith.cmpi ne, %18, %c0_i32_9 : i32
    scf.if %19 {
      %c0_10 = arith.constant 0 : index
      %c0_11 = arith.constant 0 : index
      %20 = vector.load %arg5[%c0_10, %c0_11] : memref<8x128xf32, #tpu.memory_space<vmem>>, vector<8x128xf32>
      %c0_12 = arith.constant 0 : index
      %c0_13 = arith.constant 0 : index
      %21 = vector.load %arg4[%c0_12, %c0_13] : memref<8x128xf32, #tpu.memory_space<vmem>>, vector<8x128xf32>
      tpu.vector_store %arg4[%c0_12, %c0_13], %20 {strides = array<i32>} : memref<8x128xf32, #tpu.memory_space<vmem>>, vector<8x128xf32>,
    } else {
    }
    return
  }
  func.func @transform_0(%arg0: i32, %arg1: i32) -> (i32, i32) {
    %c0_i32 = arith.constant 0 : i32
    return %arg0, %arg1 : i32, i32
  }
  func.func @transform_1(%arg0: i32, %arg1: i32) -> (i32, i32) {
    %c0_i32 = arith.constant 0 : i32
    return %arg0, %arg1 : i32, i32
  }
  func.func @transform_2(%arg0: i32, %arg1: i32) -> (i32, i32) {
    %c0_i32 = arith.constant 0 : i32
    %c0_i32_0 = arith.constant 0 : i32
    return %arg0, %c0_i32 : i32, i32
  }
}

</mosaic_0001>

<bundles_post_ra>
// kernel: tpu_custom_call.1
= control target key start
LH: loop header
LB: loop body
LE: loop exit
PB: predicated region body
PF: predicated region fallthrough
CT: control target
= control target key end

     0   :  { %7 = vsyncpa [#allocation4], 0  ;;  %s217_s0 = inlined_call_operand.hbm [shape: f32[8,256], index: 0, kind: input, shape index: {}]   ;;  %s218_s1 = inlined_call_operand.hbm [shape: f32[8,256], index: 1, kind: input, shape index: {}]   ;;  %s219_s2 = inlined_call_operand.hbm [shape: f32[8,128], index: 2, kind: output, shape index: {}]  }
   0x1   :  { %8 = vsyncpa [#allocation7], 0 }
   0x2   :  { %9 = vsyncpa [#allocation5], 0  ;;  %s163_s9 = smov [#allocation3]   ;;  %s164_s11 = smov [#allocation6]  }
   0x3   :  { %s16_s10 = sshll.u32 %s163_s9, 4  ;;  %s26_s12 = sshll.u32 %s164_s11, 4  ;;  %s17_s10 = int_to_ptr.vmem [resolvable:$true] %s16_s10  ;;  %s27_s12 = int_to_ptr.vmem [resolvable:$true] %s26_s12 }
   0x4   :  { %s91_s15 = scalar_lea.hbm %s217_s0, 256 }
   0x5   :  { %p92_p0 = scmp.ne.s32.totalorder %s217_s0, %s91_s15  ;;  %p95_p1 = scmp.lt.u32.totalorder %s91_s15, %s217_s0 }
   0x7   :  { %p97_p2 = pnand %p95_p1, %p92_p0 }
   0x9   :  { %100 = shalt.err (!%p97_p2)
}
   0xa   :  { %s101_s20 = scalar_lea.vmem %s17_s10, 256  ;;  %p106_p4 = scmp.lt.s32.totalorder %s17_s10, %s17_s10 }
   0xb   :  { %p102_p3 = scmp.ne.s32.totalorder %s17_s10, %s101_s20  ;;  %p107_p5 = scmp.lt.s32.totalorder %s101_s20, %s101_s20 }
   0xd   :  { %p108_p6 = por %p107_p5, %p106_p4 }
   0xf   :  { %p109_p7 = pnand %p108_p6, %p102_p3 }
  0x11   :  { %112 = shalt.err (!%p109_p7)
}
  0x12   :  { %19 = dma.hbm_to_vmem [thread:$0]  %s217_s0, 256, %s17_s10, [#allocation4]  }
  0x13   :  { %s113_s25 = scalar_lea.hbm %s218_s1, 256 }
  0x14   :  { %p114_p8 = scmp.ne.s32.totalorder %s218_s1, %s113_s25  ;;  %p117_p9 = scmp.lt.u32.totalorder %s113_s25, %s218_s1 }
  0x16   :  { %p119_p10 = pnand %p117_p9, %p114_p8 }
  0x18   :  { %122 = shalt.err (!%p119_p10)
}
  0x19   :  { %s123_s30 = scalar_lea.vmem %s27_s12, 256  ;;  %p128_p12 = scmp.lt.s32.totalorder %s27_s12, %s27_s12 }
  0x1a   :  { %p124_p11 = scmp.ne.s32.totalorder %s27_s12, %s123_s30  ;;  %p129_p13 = scmp.lt.s32.totalorder %s123_s30, %s123_s30 }
  0x1c   :  { %p130_p0 = por %p129_p13, %p128_p12 }
  0x1e   :  { %p131_p1 = pnand %p130_p0, %p124_p11 }
  0x20   :  { %134 = shalt.err (!%p131_p1)
}
  0x21   :  { %29 = dma.hbm_to_vmem [thread:$0]  %s218_s1, 256, %s27_s12, [#allocation7]  }
  0x22   :  { %157 = dma.done.wait [#allocation4], 256  }
  0x23   :  { %158 = vsyncadd [#allocation4], 4294967040 }
  0x24   :  { %159 = dma.done.wait [#allocation7], 256  }
  0x25   :  { %160 = vsyncadd [#allocation7], 4294967040  ;;  %v43_v0 = vld [vmem:[#allocation6] sm:$0xff]  ;;  %v44_v1 = vld [vmem:[#allocation6 + $0x8] sm:$0xff]  ;;  %s165_s1 = smov [#allocation8]  }
  0x26   :  { %v45_v2 = vmul.f32 1.442695, %v43_v0  ;;  %v47_v3 = vmul.f32 1.442695, %v44_v1  ;;  %v41_v4 = vld [vmem:[#allocation3] sm:$0xff]  ;;  %v42_v5 = vld [vmem:[#allocation3 + $0x8] sm:$0xff] }
  0x27   :  { %v49_v6 = vmul.f32 %v41_v4, %v41_v4  ;;  %v50_v7 = vmul.f32 %v42_v5, %v42_v5  ;;  %s72_s4 = sshll.u32 %s165_s1, 4  ;;  %s73_s4 = int_to_ptr.vmem [resolvable:$true] %s72_s4 }
  0x28   :  { %87 = vpow2.f32 %v45_v2  ;;  %s135_s5 = scalar_lea.vmem %s73_s4, 128  ;;  %p140_p3 = scmp.lt.s32.totalorder %s73_s4, %s73_s4 }
  0x29   :  { %89 = vpow2.f32 %v47_v3  ;;  %p136_p2 = scmp.ne.s32.totalorder %s73_s4, %s135_s5  ;;  %p141_p4 = scmp.lt.s32.totalorder %s135_s5, %s135_s5 }
  0x2b   :  { %p142_p5 = por %p141_p4, %p140_p3 }
  0x2d   :  { %p143_p6 = pnand %p142_p5, %p136_p2 }
  0x32   :  { %v88_v8 = vpop.eup %87 }
  0x33   :  { %v90_v9 = vpop.eup %89  ;;  %v51_v10 = vadd.f32 %v88_v8, %v49_v6 }
  0x34   :  { %v52_v11 = vadd.f32 %v90_v9, %v50_v7 }
  0x35   :  { %v82_v12 = vadd.f32 -1.0, %v51_v10 }
  0x36   :  { %v83_v13 = vadd.f32 -1.0, %v52_v11 }
  0x37   :  { %v55_v14 = vsub.f32 %v82_v12, %v43_v0 }
  0x38   :  { %v56_v15 = vsub.f32 %v83_v13, %v44_v1 }
  0x3a   :  { %v59_v16 = vadd.f32 %v56_v15, %v55_v14 }
  0x3c   :  { %65 = vst [vmem:[#allocation8] sm:$0xff] %v59_v16 }
  0x3d   :  { %146 = shalt.err (!%p143_p6)
}
  0x3e   :  { %s147_s8 = scalar_lea.hbm %s219_s2, 128 }
  0x3f   :  { %p148_p7 = scmp.ne.s32.totalorder %s219_s2, %s147_s8  ;;  %p151_p8 = scmp.lt.u32.totalorder %s147_s8, %s219_s2 }
  0x41   :  { %p153_p9 = pnand %p151_p8, %p148_p7 }
  0x43   :  { %156 = shalt.err (!%p153_p9)
}
  0x44   :  { %75 = dma.vmem_to_hbm [thread:$0]  %s73_s4, 128, %s219_s2, [#allocation5]  }
  0x45   :  { %161 = dma.done.wait [#allocation5], 128  }
  0x46   :  { %162 = vsyncadd [#allocation5], 4294967168 }
  0x47   :  { %79 = vsyncpa [#allocation4], 1 }
  0x48   :  { %80 = vsyncpa [#allocation7], 1 }
  0x49   :  { %81 = vsyncpa [#allocation5], 1 }

</bundles_post_ra>
